<compile_context>
chip_gen: v7x
topology: tpu7x:2x2x1
jax: 0.10.0
libtpu: 0.0.40
codegen_flags: <defaults>
</compile_context>

<pallas_src>
import functools
import math

import jax
import jax.numpy as jnp
from jax import lax
from jax.experimental import pallas as pl
from jax.experimental.pallas import tpu as pltpu

_MIB = 1024 * 1024


def _vmem_capacity_bytes() -> int:
    """Physical VMEM per TensorCore; conservative 64 MiB (v7x) fallback."""
    try:
        cap = getattr(pltpu.get_tpu_info(), "vmem_capacity_bytes", None)
        if cap:
            return int(cap)
    except Exception:
        pass
    return 64 * _MIB


def _is_v5() -> bool:
    try:
        return "v5" in jax.devices()[0].device_kind.lower()
    except Exception:
        return False


def _round_up(x, m):
    return ((x + m - 1) // m) * m


def _pick_tm(n_tokens):
    # 512-row tiles reach ~85% of HBM roofline vs ~63% at 256 (measured
    # mem-bound tiling data); keep multiples of 8/128 for layout.
    if n_tokens >= 512:
        return 512
    if n_tokens >= 256:
        return 256
    return 128


# ----------------------------------------------------------------------------
# Path 1: VMEM-resident table, one-hot MXU gather (small vocab).
# ----------------------------------------------------------------------------
def _onehot_kernel(ids_ref, lut_ref, out_ref, *, vocab_padded, scale):
    ids = ids_ref[...]                                   # (TM, 1) int32, one id per sublane
    tm = ids.shape[0]
    col = lax.broadcasted_iota(jnp.int32, (tm, vocab_padded), 1)
    # TODO(synk): build the one-hot in bf16 even for f32 tables once Mosaic's
    # mixed-precision dot (bf16 lhs x f32 rhs) is confirmed to lower; 0/1 is
    # exact in bf16 and it halves the MXU f32-decomposition passes.  With a
    # bf16 table the one-hot below is already bf16.
    one_hot = (ids == col).astype(lut_ref.dtype)         # (TM, Vpad)
    rows = jnp.dot(one_hot, lut_ref[...],                # (TM, D) gather on the MXU
                   preferred_element_type=jnp.float32)
    out_ref[...] = (rows * scale).astype(out_ref.dtype)  # scale on the VPU, dense store


def _embed_onehot(ids_col, lut_padded, n_padded, tm, scale, vmem_limit):
    vocab_padded, d_model = lut_padded.shape
    n_tiles = n_padded // tm
    itemsize = jnp.dtype(lut_padded.dtype).itemsize
    kernel = functools.partial(_onehot_kernel, vocab_padded=vocab_padded, scale=scale)
    return pl.pallas_call(
        kernel,
        out_shape=jax.ShapeDtypeStruct((n_padded, d_model), lut_padded.dtype),
        grid=(n_tiles,),
        in_specs=[
            # (TM, 1) ids per tile: TM on the sublane axis so the one-hot
            # compare needs no in-kernel relayout.
            pl.BlockSpec((tm, 1), lambda t: (t, 0)),
            # Whole (vocab-padded) table resident in VMEM for the kernel's
            # lifetime: copied in once, no per-step table DMA.
            pl.BlockSpec(memory_space=pltpu.MemorySpace.VMEM),
        ],
        out_specs=pl.BlockSpec((tm, d_model), lambda t: (t, 0)),
        compiler_params=pltpu.CompilerParams(
            # Token tiles are independent -> shard across TensorCores on v7x.
            dimension_semantics=("parallel",),
            vmem_limit_bytes=vmem_limit,
        ),
        cost_estimate=pl.CostEstimate(
            flops=2 * n_padded * vocab_padded * d_model + n_padded * d_model,
            transcendentals=0,
            bytes_accessed=(vocab_padded * d_model * itemsize      # table read once
                            + n_padded * d_model * itemsize        # output writeback
                            + n_padded * 4),                       # ids
        ),
    )(ids_col, lut_padded)


# ----------------------------------------------------------------------------
# Paths 2/3: row-DMA gather.  Table either VMEM-resident (medium vocab) or in
# HBM (large vocab, cross-tile double-buffered).
# ----------------------------------------------------------------------------
def _dma_gather_kernel(ids_ref, lut_ref, out_ref, rows_vmem, sems, *,
                       tm, n_tiles, scale, prefetch_next):
    t = pl.program_id(0)

    def issue_tile(tile_idx, slot_idx):
        # One row DMA per token.  All TM copies signal the same per-slot
        # semaphore, so on completion it holds exactly tm*d_model*itemsize
        # bytes.
        # TODO(synk): bound DMAs in flight with a ~16-32 row issue-ahead
        # window + rolling waits if descriptor pressure shows up at TM=512.
        @pl.loop(0, tm)
        def _issue(r):
            row = ids_ref[tile_idx, r]
            pltpu.make_async_copy(lut_ref.at[row],
                                  rows_vmem.at[slot_idx, r],
                                  sems.at[slot_idx]).start()

    def wait_tile(slot_idx):
        # Aggregate wait for all TM row DMAs of this slot.  Only the
        # descriptor's byte count matters for the wait, and the (tm, d_model)
        # slab below equals -- by construction -- the sum of the tm
        # (d_model,)-sized row copies signaled on sems[slot_idx].
        pltpu.make_async_copy(rows_vmem.at[slot_idx],
                              rows_vmem.at[slot_idx],
                              sems.at[slot_idx]).wait()

    if prefetch_next:
        # Table in HBM: cross-tile double buffering.  Tile t's rows were
        # started during step t-1; start tile t+1 now so its HBM latency
        # overlaps this step's wait + scale + output writeback.
        slot = t & 1

        @pl.when(t == 0)
        def _():
            issue_tile(0, 0)              # prime the pipeline (latency exposed once)

        @pl.when(t + 1 < n_tiles)
        def _():
            issue_tile(t + 1, 1 - slot)
    else:
        # Table resident in VMEM: per-row latency is tiny, keep each grid
        # step self-contained so the axis can stay "parallel".
        slot = 0
        issue_tile(t, 0)

    wait_tile(slot)
    # Single dense (TM, D) slab write: lane-dense unmasked stores + full-tile
    # writeback DMA.
    out_ref[...] = (rows_vmem[slot].astype(jnp.float32) * scale).astype(out_ref.dtype)


def _embed_dma_gather(ids_2d, lut, n_padded, tm, scale, resident, vmem_limit):
    vocab, d_model = lut.shape
    n_tiles = n_padded // tm
    itemsize = jnp.dtype(lut.dtype).itemsize
    n_slots = 1 if resident else 2
    kernel = functools.partial(_dma_gather_kernel, tm=tm, n_tiles=n_tiles,
                               scale=scale, prefetch_next=not resident)
    table_traffic = (vocab if resident else n_padded) * d_model * itemsize
    return pl.pallas_call(
        kernel,
        out_shape=jax.ShapeDtypeStruct((n_padded, d_model), lut.dtype),
        grid_spec=pltpu.PrefetchScalarGridSpec(
            # ids land in SMEM as (n_tiles, tm): 2-D SMEM padding keeps this
            # at ~4*n_padded bytes (no 1-D next-pow2 blow-up).
            # TODO(synk): per-tile (tm,) SMEM input blocks would remove the
            # sequence-length ceiling entirely.
            num_scalar_prefetch=1,
            grid=(n_tiles,),
            in_specs=[pl.BlockSpec(
                memory_space=pltpu.MemorySpace.VMEM if resident else pl.ANY)],
            out_specs=pl.BlockSpec((tm, d_model), lambda t, ids: (t, 0)),
            scratch_shapes=[
                pltpu.VMEM((n_slots, tm, d_model), lut.dtype),   # gathered slabs
                pltpu.SemaphoreType.DMA((n_slots,)),             # one sem per slot
            ],
        ),
        compiler_params=pltpu.CompilerParams(
            # The HBM variant carries DMA state across grid steps (slot
            # ping-pong), so its axis must be "arbitrary"; the resident
            # variant keeps "parallel" for v7x 2-TC sharding.
            dimension_semantics=("parallel",) if resident else ("arbitrary",),
            vmem_limit_bytes=vmem_limit,
        ),
        cost_estimate=pl.CostEstimate(
            flops=n_padded * d_model,                            # the scale multiply
            transcendentals=0,
            bytes_accessed=table_traffic + n_padded * d_model * itemsize + n_padded * 4,
        ),
    )(ids_2d, lut)


# ----------------------------------------------------------------------------
# Wrapper: Embeddings.forward(x) == lut[x] * sqrt(d_model)
# ----------------------------------------------------------------------------
def embeddings_forward(token_ids: jax.Array, lut: jax.Array, *,
                       force_path: str | None = None) -> jax.Array:
    """token_ids: integer array of any leading shape (e.g. (B, S));
    lut: (vocab, d_model) embedding table (f32 or bf16).
    Returns lut[token_ids] * sqrt(d_model) with dtype = lut.dtype.
    force_path in {None, "onehot", "vmem_gather", "hbm_gather"} (testing only)."""
    vocab, d_model = lut.shape
    lead_shape = token_ids.shape
    n_tokens = 1
    for s in lead_shape:
        n_tokens *= int(s)
    scale = math.sqrt(d_model)
    itemsize = jnp.dtype(lut.dtype).itemsize

    # ---- generation-aware budgets -------------------------------------
    vmem_cap = _vmem_capacity_bytes()                    # 128 MiB v5e/v6e, 64 MiB v7x
    vmem_limit = max(32 * _MIB, int(vmem_cap * 0.75))    # scoped-VMEM request
    resident_budget = vmem_limit - 8 * _MIB              # headroom for Mosaic scratch
    # v5e's MXU (197 TF/s bf16, no bf16 VPU) makes the O(TM*V*D) one-hot
    # gather expensive at a much smaller vocab than on v6e/v7x.
    one_hot_max_vocab = 1024 if _is_v5() else 4096

    tm = _pick_tm(n_tokens)
    v_pad = _round_up(vocab, 256)                        # MXU-pass-aligned contraction

    def onehot_vmem_bytes(tile_m):
        return (v_pad * d_model * itemsize               # resident (padded) table
                + 2 * tile_m * d_model * itemsize        # double-buffered out blocks
                + tile_m * v_pad * (itemsize + 4)        # one-hot + iota intermediates
                + tile_m * d_model * 4                   # f32 MXU accumulator
                + 2 * tile_m * 4)                        # ids blocks

    def gather_resident_vmem_bytes(tile_m):
        return (vocab * d_model * itemsize               # resident table
                + 2 * tile_m * d_model * itemsize        # double-buffered out blocks
                + tile_m * d_model * itemsize)           # gathered slab scratch

    # ---- path selection -------------------------------------------------
    path = force_path
    if path is None:
        if vocab <= one_hot_max_vocab:
            for cand in (tm, 256, 128):
                if cand <= tm and onehot_vmem_bytes(cand) <= resident_budget:
                    path, tm = "onehot", cand
                    break
        if path is None:
            path = ("vmem_gather"
                    if gather_resident_vmem_bytes(tm) <= resident_budget
                    else "hbm_gather")

    n_padded = _round_up(max(n_tokens, 1), tm)

    flat_ids = token_ids.reshape(-1).astype(jnp.int32)
    # Out-of-range safety: an id >= vocab would drive a row DMA out of bounds.
    flat_ids = jnp.clip(flat_ids, 0, vocab - 1)
    # Tail handling: pad to a tile multiple with a valid id (row 0); the
    # padded rows are sliced off below.
    flat_ids = jnp.pad(flat_ids, (0, n_padded - n_tokens))

    if path == "onehot":
        lut_p = lut if v_pad == vocab else jnp.pad(lut, ((0, v_pad - vocab), (0, 0)))
        out_flat = _embed_onehot(flat_ids.reshape(n_padded, 1), lut_p,
                                 n_padded, tm, scale, vmem_limit)
    else:
        ids_2d = flat_ids.reshape(n_padded // tm, tm)
        out_flat = _embed_dma_gather(ids_2d, lut, n_padded, tm, scale,
                                     resident=(path == "vmem_gather"),
                                     vmem_limit=vmem_limit)

    return out_flat[:n_tokens].reshape(*lead_shape, d_model)


if __name__ == "__main__":
    key = jax.random.PRNGKey(0)
    k1, k2, k3, k4 = jax.random.split(key, 4)

    # Test 1: module-sized shapes -> auto-dispatch hits the VMEM-resident
    # one-hot/MXU path (vocab=50, d_model=128).
    batch, seq, vocab, d_model = 2, 8, 50, 128
    token_ids = jax.random.randint(k1, (batch, seq), 0, vocab, dtype=jnp.int32)
    lut = jax.random.normal(k2, (vocab, d_model), dtype=jnp.float32)  # nn.Embedding init N(0,1)
    ref = jnp.take(lut, token_ids, axis=0) * math.sqrt(d_model)

    out = jax.block_until_ready(embeddings_forward(token_ids, lut))
    assert out.shape == (batch, seq, d_model) and out.dtype == lut.dtype
    # Tolerance leaves headroom for the MXU's f32 pass decomposition in the
    # one-hot gather; a wrong-row / wrong-scale bug would be off by O(1)-O(10).
    assert jnp.allclose(out, ref, atol=1e-3, rtol=5e-3), float(jnp.max(jnp.abs(out - ref)))

    # Test 2: forced VMEM-resident row-DMA gather path (exact copy + scale).
    out2 = jax.block_until_ready(
        embeddings_forward(token_ids, lut, force_path="vmem_gather"))
    assert jnp.allclose(out2, ref, atol=1e-5, rtol=1e-6), float(jnp.max(jnp.abs(out2 - ref)))

    # Test 3: forced HBM gather path with >1 token tile so the cross-tile
    # double buffering (slot ping-pong + next-tile prefetch) is exercised.
    vocab3, d3 = 512, 128
    ids3 = jax.random.randint(k3, (2, 160), 0, vocab3, dtype=jnp.int32)
    lut3 = jax.random.normal(k4, (vocab3, d3), dtype=jnp.float32)
    ref3 = jnp.take(lut3, ids3, axis=0) * math.sqrt(d3)
    out3 = jax.block_until_ready(
        embeddings_forward(ids3, lut3, force_path="hbm_gather"))
    assert out3.shape == (2, 160, d3)
    assert jnp.allclose(out3, ref3, atol=1e-5, rtol=1e-6), float(jnp.max(jnp.abs(out3 - ref3)))

    print("KERNEL_OK")
</pallas_src>

<mosaic_0001>
module attributes {stable_mosaic.version = 11 : i64} {
  func.func @_onehot_kernel(%arg0: i32, %arg1: memref<128x1xi32, #tpu.memory_space<vmem>>, %arg2: memref<256x128xf32, #tpu.memory_space<vmem>>, %arg3: memref<128x128xf32, #tpu.memory_space<vmem>>) attributes {dimension_semantics = [#tpu.dimension_semantics<parallel>], iteration_bounds = array<i64: 1>, scalar_prefetch = 0 : i64, scratch_operands = 0 : i64, tpu.core_type = #tpu.core_type<tc>, window_params = [{transform_indices = @transform_0, window_bounds = array<i64: 128, 1>}, {pipeline_mode = #tpu.pipeline_mode<synchronous>, transform_indices = @transform_1, window_bounds = array<i64: 256, 128>}, {transform_indices = @transform_2, window_bounds = array<i64: 128, 128>}]} {
    %c0 = arith.constant 0 : index
    %c0_0 = arith.constant 0 : index
    %0 = vector.load %arg1[%c0, %c0_0] : memref<128x1xi32, #tpu.memory_space<vmem>>, vector<128x1xi32>
    %1 = tpu.iota {dimensions = array<i32: 1>} : vector<128x256xi32>
    %2 = vector.broadcast %0 : vector<128x1xi32> to vector<128x256xi32>
    %3 = arith.cmpi eq, %2, %1 : vector<128x256xi32>
    %4 = arith.extui %3 : vector<128x256xi1> to vector<128x256xi32>
    %5 = arith.sitofp %4 : vector<128x256xi32> to vector<128x256xf32>
    %c0_1 = arith.constant 0 : index
    %c0_2 = arith.constant 0 : index
    %6 = vector.load %arg2[%c0_1, %c0_2] : memref<256x128xf32, #tpu.memory_space<vmem>>, vector<256x128xf32>
    %cst = arith.constant dense<0.000000e+00> : vector<128x128xf32>
    %7 = tpu.matmul %5, %6, %cst {dimension_numbers = #tpu.dot_dimension_numbers<[1], [0], [0], [1], [0, 0, 1, 1], [], []>} : vector<128x256xf32>, vector<256x128xf32>, vector<128x128xf32> -> vector<128x128xf32>
    %cst_3 = arith.constant 11.3137083 : f32
    %8 = vector.broadcast %cst_3 : f32 to vector<128x128xf32>
    %9 = arith.mulf %7, %8 : vector<128x128xf32>
    %c0_4 = arith.constant 0 : index
    %c0_5 = arith.constant 0 : index
    %10 = vector.load %arg3[%c0_4, %c0_5] : memref<128x128xf32, #tpu.memory_space<vmem>>, vector<128x128xf32>
    tpu.vector_store %arg3[%c0_4, %c0_5], %9 {strides = array<i32>} : memref<128x128xf32, #tpu.memory_space<vmem>>, vector<128x128xf32>,
    return
  }
  func.func @transform_0(%arg0: i32) -> (i32, i32) {
    %c0_i32 = arith.constant 0 : i32
    %c0_i32_0 = arith.constant 0 : i32
    return %arg0, %c0_i32 : i32, i32
  }
  func.func @transform_1(%arg0: i32) -> (i32, i32) {
    %c0_i32 = arith.constant 0 : i32
    %c0_i32_0 = arith.constant 0 : i32
    %c0_i32_1 = arith.constant 0 : i32
    return %c0_i32, %c0_i32_0 : i32, i32
  }
  func.func @transform_2(%arg0: i32) -> (i32, i32) {
    %c0_i32 = arith.constant 0 : i32
    %c0_i32_0 = arith.constant 0 : i32
    return %arg0, %c0_i32 : i32, i32
  }
}

</mosaic_0001>

<bundles_post_ra>
// kernel: tpu_custom_call.1
= control target key start
LH: loop header
LB: loop body
LE: loop exit
PB: predicated region body
PF: predicated region fallthrough
CT: control target
= control target key end

     0   :  { %7 = vsyncpa [#allocation3], 0  ;;  %s831_s0 = inlined_call_operand.vmem [shape: s32[128,1], index: 0, kind: input, shape index: {}]   ;;  %s832_s1 = inlined_call_operand.hbm [shape: f32[256,128], index: 1, kind: input, shape index: {}]   ;;  %s833_s2 = inlined_call_operand.hbm [shape: f32[128,128], index: 2, kind: output, shape index: {}]  }
   0x1   :  { %8 = vsyncpa [#allocation4], 0  ;;  %s663_s9 = smov [#allocation2]   ;;  %s615_s13 = scalar_lea.hbm %s832_s1, 4096 }
   0x2   :  { %s16_s10 = sshll.u32 %s663_s9, 4  ;;  %p616_p0 = scmp.ne.s32.totalorder %s832_s1, %s615_s13  ;;  %s17_s10 = int_to_ptr.vmem [resolvable:$true] %s16_s10 }
   0x3   :  { %p619_p1 = scmp.lt.u32.totalorder %s615_s13, %s832_s1 }
   0x5   :  { %p621_p2 = pnand %p619_p1, %p616_p0 }
   0x7   :  { %624 = shalt.err (!%p621_p2)
}
   0x8   :  { %s625_s18 = scalar_lea.vmem %s17_s10, 4096  ;;  %p630_p4 = scmp.lt.s32.totalorder %s17_s10, %s17_s10 }
   0x9   :  { %p626_p3 = scmp.ne.s32.totalorder %s17_s10, %s625_s18  ;;  %p631_p5 = scmp.lt.s32.totalorder %s625_s18, %s625_s18 }
   0xb   :  { %p632_p6 = por %p631_p5, %p630_p4 }
   0xd   :  { %p633_p7 = pnand %p632_p6, %p626_p3 }
   0xf   :  { %636 = shalt.err (!%p633_p7)
}
  0x10   :  { %s664_s19 = smov 128   ;;  %s665_s20 = smov 8  }
  0x11   :  { %22 = dma.hbm_to_vmem [thread:$0]  %s832_s1, 4096, %s17_s10, [#allocation3], %s664_s19, %s664_s19, %s665_s20  }
  0x12   :  { %659 = dma.done.wait [#allocation3], 4096  }
  0x13   :  { %660 = vsyncadd [#allocation3], 4294963200  ;;  %v666_v0 = vmov 0   ;;  %v27_v1 = vld [vmem:[%s831_s0 + $0x8] sm:$0xff]  ;;  %v26_v2 = vld [vmem:[%s831_s0] sm:$0xff] }
  0x14   :  { %614 = vset.pattern.permute.xlu1 %v666_v0  ;;  %613 = vset.pattern.permute.xlu0 %v666_v0  ;;  %v35_v3 = vld [vmem:[%s831_s0 + $0x48] sm:$0xff]  ;;  %v34_v4 = vld [vmem:[%s831_s0 + $0x40] sm:$0xff]  ;;  %v36_v5 = vld [vmem:[%s831_s0 + $0x50] sm:$0xff] }
  0x15   :  { %49 = vperm.xlu1 %614, %v27_v1   ;;  %46 = vperm.xlu0 %613, %v26_v2   ;;  %v28_v6 = vld [vmem:[%s831_s0 + $0x10] sm:$0xff]  ;;  %v205_v7 = vld [vmem:[#allocation2 + $0x80] sm:$0xff]  ;;  %v206_v8 = vld [vmem:[#allocation2 + $0x88] sm:$0xff]  ;;  %v42_v1 = vlaneseq }
  0x16   :  { %v559_v9 = vpack.c.bf16 %v206_v8, %v205_v7  ;;  %v189_v10 = vld [vmem:[#allocation2] sm:$0xff]  ;;  %v190_v11 = vld [vmem:[#allocation2 + $0x8] sm:$0xff]  ;;  %v207_v12 = vld [vmem:[#allocation2 + $0x90] sm:$0xff] }
  0x17   :  { %v561_v13 = vpack.c.bf16 %v190_v11, %v189_v10  ;;  %v208_v14 = vld [vmem:[#allocation2 + $0x98] sm:$0xff]  ;;  %v191_v15 = vld [vmem:[#allocation2 + $0x10] sm:$0xff]  ;;  %v209_v18 = vld [vmem:[#allocation2 + $0xa0] sm:$0xff]  ;;  %v747_v2 = vand.u32 127, %v42_v1 }
  0x18   :  { %v192_v16 = vld [vmem:[#allocation2 + $0x18] sm:$0xff]  ;;  %560 = vmatprep.subr.bf16.mxu0 %v559_v9  ;;  %591 = vmatprep.subr.bf16.mxu1 %v559_v9  ;;  %v563_v17 = vpack.c.bf16 %v208_v14, %v207_v12  ;;  %v210_v19 = vld [vmem:[#allocation2 + $0xa8] sm:$0xff]  ;;  %v193_v24 = vld [vmem:[#allocation2 + $0x20] sm:$0xff] }
  0x19   :  { %73 = vperm.xlu1 %614, %v35_v3   ;;  %70 = vperm.xlu0 %613, %v34_v4   ;;  %v37_v20 = vld [vmem:[%s831_s0 + $0x58] sm:$0xff]  ;;  %v565_v22 = vpack.c.bf16 %v192_v16, %v191_v15  ;;  %v567_v23 = vpack.c.bf16 %v210_v19, %v209_v18  ;;  %v194_v25 = vld [vmem:[#allocation2 + $0x28] sm:$0xff]  ;;  %v211_v26 = vld [vmem:[#allocation2 + $0xb0] sm:$0xff]  ;;  %v750_v3 = vadd.s32 128, %v747_v2 }
  0x1a   :  { %v29_v21 = vld [vmem:[%s831_s0 + $0x18] sm:$0xff]  ;;  %562 = vmatpush3.bf16.msra.mxu0 %v561_v13  ;;  %599 = vmatpush3.bf16.msra.mxu1 %v561_v13  ;;  %v38_v28 = vld [vmem:[%s831_s0 + $0x60] sm:$0xff]  ;;  %v569_v30 = vpack.c.bf16 %v194_v25, %v193_v24  ;;  %v195_v32 = vld [vmem:[#allocation2 + $0x30] sm:$0xff] }
  0x1b   :  { %564 = vmatprep.subr.bf16.mxu0 %v563_v17  ;;  %592 = vmatprep.subr.bf16.mxu1 %v563_v17  ;;  %v212_v27 = vld [vmem:[#allocation2 + $0xb8] sm:$0xff]  ;;  %v30_v29 = vld [vmem:[%s831_s0 + $0x20] sm:$0xff]  ;;  %v214_v35 = vld [vmem:[#allocation2 + $0xc8] sm:$0xff] }
  0x1c   :  { %v571_v31 = vpack.c.bf16 %v212_v27, %v211_v26  ;;  %v196_v33 = vld [vmem:[#allocation2 + $0x38] sm:$0xff]  ;;  %v213_v34 = vld [vmem:[#allocation2 + $0xc0] sm:$0xff]  ;;  %v39_v36 = vld [vmem:[%s831_s0 + $0x68] sm:$0xff] }
  0x1d   :  { %76 = vperm.xlu1 %614, %v36_v5   ;;  %52 = vperm.xlu0 %613, %v28_v6   ;;  %v31_v37 = vld [vmem:[%s831_s0 + $0x28] sm:$0xff]  ;;  %v573_v38 = vpack.c.bf16 %v196_v33, %v195_v32  ;;  %v575_v39 = vpack.c.bf16 %v214_v35, %v213_v34  ;;  %v197_v40 = vld [vmem:[#allocation2 + $0x40] sm:$0xff]  ;;  %v215_v42 = vld [vmem:[#allocation2 + $0xd0] sm:$0xff]  ;;  %v667_v6 = vmov 1.0  }
  0x1e   :  { %566 = vmatpush3.bf16.msra.mxu0 %v565_v22  ;;  %600 = vmatpush3.bf16.msra.mxu1 %v565_v22  ;;  %v198_v41 = vld [vmem:[#allocation2 + $0x48] sm:$0xff]  ;;  %v216_v43 = vld [vmem:[#allocation2 + $0xd8] sm:$0xff]  ;;  %v40_v44 = vld [vmem:[%s831_s0 + $0x70] sm:$0xff] }
  0x1f   :  { %568 = vmatprep.subr.bf16.mxu0 %v567_v23  ;;  %593 = vmatprep.subr.bf16.mxu1 %v567_v23  ;;  %v32_v45 = vld [vmem:[%s831_s0 + $0x30] sm:$0xff]  ;;  %v577_v46 = vpack.c.bf16 %v198_v41, %v197_v40  ;;  %v579_v47 = vpack.c.bf16 %v216_v43, %v215_v42  ;;  %v200_v49 = vld [vmem:[#allocation2 + $0x58] sm:$0xff]  ;;  %v217_v50 = vld [vmem:[#allocation2 + $0xe0] sm:$0xff] }
  0x20   :  { %v199_v48 = vld [vmem:[#allocation2 + $0x50] sm:$0xff]  ;;  %v218_v51 = vld [vmem:[#allocation2 + $0xe8] sm:$0xff]  ;;  %v41_v52 = vld [vmem:[%s831_s0 + $0x78] sm:$0xff] }
  0x21   :  { %79 = vperm.xlu1 %614, %v37_v20   ;;  %55 = vperm.xlu0 %613, %v29_v21   ;;  %v33_v53 = vld [vmem:[%s831_s0 + $0x38] sm:$0xff]  ;;  %v581_v54 = vpack.c.bf16 %v200_v49, %v199_v48  ;;  %v583_v55 = vpack.c.bf16 %v218_v51, %v217_v50  ;;  %v201_v56 = vld [vmem:[#allocation2 + $0x60] sm:$0xff]  ;;  %v202_v57 = vld [vmem:[#allocation2 + $0x68] sm:$0xff]  ;;  %s668_s0 = smov [#allocation5]  }
  0x22   :  { %570 = vmatpush3.bf16.msra.mxu0 %v569_v30  ;;  %601 = vmatpush3.bf16.msra.mxu1 %v569_v30  ;;  %v219_v58 = vld [vmem:[#allocation2 + $0xf0] sm:$0xff]  ;;  %v220_v59 = vld [vmem:[#allocation2 + $0xf8] sm:$0xff]  ;;  %v585_v60 = vpack.c.bf16 %v202_v57, %v201_v56  ;;  %s403_s28 = sshll.u32 %s668_s0, 4  ;;  %s404_s28 = int_to_ptr.vmem [resolvable:$true] %s403_s28 }
  0x23   :  { %572 = vmatprep.subr.bf16.mxu0 %v571_v31  ;;  %594 = vmatprep.subr.bf16.mxu1 %v571_v31  ;;  %v587_v61 = vpack.c.bf16 %v220_v59, %v219_v58  ;;  %v203_v62 = vld [vmem:[#allocation2 + $0x70] sm:$0xff]  ;;  %v204_v63 = vld [vmem:[#allocation2 + $0x78] sm:$0xff]  ;;  %s637_s1 = scalar_lea.vmem %s404_s28, 2048  ;;  %p642_p9 = scmp.lt.s32.totalorder %s404_s28, %s404_s28 }
  0x24   :  { %v589_v0 = vpack.c.bf16 %v204_v63, %v203_v62  ;;  %p638_p8 = scmp.ne.s32.totalorder %s404_s28, %s637_s1  ;;  %p643_p10 = scmp.lt.s32.totalorder %s637_s1, %s637_s1 }
  0x25   :  { %82 = vperm.xlu1 %614, %v38_v28   ;;  %58 = vperm.xlu0 %613, %v30_v29  }
  0x26   :  { %574 = vmatpush3.bf16.msra.mxu0 %v573_v38  ;;  %602 = vmatpush3.bf16.msra.mxu1 %v573_v38  ;;  %p644_p11 = por %p643_p10, %p642_p9 }
  0x27   :  { %576 = vmatprep.subr.bf16.mxu0 %v575_v39  ;;  %595 = vmatprep.subr.bf16.mxu1 %v575_v39 }
  0x28   :  { %p645_p12 = pnand %p644_p11, %p638_p8 }
  0x29   :  { %85 = vperm.xlu1 %614, %v39_v36   ;;  %61 = vperm.xlu0 %613, %v31_v37  }
  0x2a   :  { %578 = vmatpush3.bf16.msra.mxu0 %v577_v46  ;;  %603 = vmatpush3.bf16.msra.mxu1 %v577_v46 }
  0x2b   :  { %580 = vmatprep.subr.bf16.mxu0 %v579_v47  ;;  %596 = vmatprep.subr.bf16.mxu1 %v579_v47 }
  0x2d   :  { %88 = vperm.xlu1 %614, %v40_v44   ;;  %64 = vperm.xlu0 %613, %v32_v45  }
  0x2e   :  { %582 = vmatpush3.bf16.msra.mxu0 %v581_v54  ;;  %604 = vmatpush3.bf16.msra.mxu1 %v581_v54 }
  0x2f   :  { %584 = vmatprep.subr.bf16.mxu0 %v583_v55  ;;  %597 = vmatprep.subr.bf16.mxu1 %v583_v55 }
  0x31   :  { %91 = vperm.xlu1 %614, %v41_v52   ;;  %67 = vperm.xlu0 %613, %v33_v53  }
  0x32   :  { %586 = vmatpush3.bf16.msra.mxu0 %v585_v60  ;;  %605 = vmatpush3.bf16.msra.mxu1 %v585_v60 }
  0x33   :  { %588 = vmatprep.subr.bf16.mxu0 %v587_v61  ;;  %598 = vmatprep.subr.bf16.mxu1 %v587_v61 }
  0x36   :  { %590 = vmatpush3.bf16.msra.mxu0 %v589_v0  ;;  %606 = vmatpush3.bf16.msra.mxu1 %v589_v0 }
  0x94   :  { %v50_v4 = vpop.permute.xlu1 %49  ;;  %v47_v5 = vpop.permute.xlu0 %46 }
  0x95   :  { %vm96_vm0 = vcmp.eq.s32.totalorder %v50_v4, %v750_v3  ;;  %vm93_vm1 = vcmp.eq.s32.totalorder %v47_v5, %v747_v2  ;;  %vm94_vm2 = vcmp.eq.s32.totalorder %v47_v5, %v750_v3  ;;  %vm95_vm3 = vcmp.eq.s32.totalorder %v50_v4, %v747_v2 }
  0x96   :  { %447 = vmatprep.mubr.msk.f32.mxu0 %vm94_vm2, %v667_v6 }
  0x97   :  { %448 = vmatmul.mubr.msk.f32.vlgmr.msra.gmra.mrb[0].mxu0 %vm93_vm1, %v667_v6 }
  0x98   :  { %v74_v7 = vpop.permute.xlu1 %73  ;;  %v71_v8 = vpop.permute.xlu0 %70  ;;  %449 = vmatprep.mubr.msk.f32.mxu0 %vm96_vm0, %v667_v6 }
  0x99   :  { %vm109_vm4 = vcmp.eq.s32.totalorder %v71_v8, %v747_v2  ;;  %vm110_vm5 = vcmp.eq.s32.totalorder %v71_v8, %v750_v3  ;;  %vm112_vm6 = vcmp.eq.s32.totalorder %v74_v7, %v750_v3  ;;  %vm111_vm9 = vcmp.eq.s32.totalorder %v74_v7, %v747_v2 }
  0x9a   :  { %463 = vmatprep.mubr.msk.f32.mxu1 %vm110_vm5, %v667_v6 }
  0x9b   :  { %450 = vmatmul.mubr.msk.f32.gmra.mrb[2].mxu0 %vm95_vm3, %v667_v6  ;;  %464 = vmatmul.mubr.msk.f32.vlgmr.msra.gmra.mrb[0].mxu1 %vm109_vm4, %v667_v6 }
  0x9c   :  { %v77_v9 = vpop.permute.xlu1 %76  ;;  %465 = vmatprep.mubr.msk.f32.mxu1 %vm112_vm6, %v667_v6  ;;  %v53_v10 = vpop.permute.xlu0 %52 }
  0x9d   :  { %vm97_vm7 = vcmp.eq.s32.totalorder %v53_v10, %v747_v2  ;;  %vm98_vm8 = vcmp.eq.s32.totalorder %v53_v10, %v750_v3  ;;  %vm114_vm10 = vcmp.eq.s32.totalorder %v77_v9, %v750_v3  ;;  %vm113_vm13 = vcmp.eq.s32.totalorder %v77_v9, %v747_v2 }
  0x9e   :  { %451 = vmatprep.mubr.msk.f32.mxu0 %vm98_vm8, %v667_v6 }
  0x9f   :  { %452 = vmatmul.mubr.msk.f32.gmra.mrb[4].mxu0 %vm97_vm7, %v667_v6  ;;  %466 = vmatmul.mubr.msk.f32.gmra.mrb[2].mxu1 %vm111_vm9, %v667_v6 }
  0xa0   :  { %v80_v11 = vpop.permute.xlu1 %79  ;;  %467 = vmatprep.mubr.msk.f32.mxu1 %vm114_vm10, %v667_v6  ;;  %v56_v12 = vpop.permute.xlu0 %55 }
  0xa1   :  { %vm99_vm11 = vcmp.eq.s32.totalorder %v56_v12, %v747_v2  ;;  %vm100_vm12 = vcmp.eq.s32.totalorder %v56_v12, %v750_v3  ;;  %vm116_vm14 = vcmp.eq.s32.totalorder %v80_v11, %v750_v3  ;;  %vm115_vm1 = vcmp.eq.s32.totalorder %v80_v11, %v747_v2 }
  0xa2   :  { %453 = vmatprep.mubr.msk.f32.mxu0 %vm100_vm12, %v667_v6 }
  0xa3   :  { %454 = vmatmul.mubr.msk.f32.gmra.mrb[6].mxu0 %vm99_vm11, %v667_v6  ;;  %468 = vmatmul.mubr.msk.f32.gmra.mrb[4].mxu1 %vm113_vm13, %v667_v6 }
  0xa4   :  { %v83_v13 = vpop.permute.xlu1 %82  ;;  %469 = vmatprep.mubr.msk.f32.mxu1 %vm116_vm14, %v667_v6  ;;  %v59_v14 = vpop.permute.xlu0 %58 }
  0xa5   :  { %vm101_vm15 = vcmp.eq.s32.totalorder %v59_v14, %v747_v2  ;;  %vm102_vm0 = vcmp.eq.s32.totalorder %v59_v14, %v750_v3  ;;  %vm118_vm2 = vcmp.eq.s32.totalorder %v83_v13, %v750_v3  ;;  %vm117_vm5 = vcmp.eq.s32.totalorder %v83_v13, %v747_v2 }
  0xa6   :  { %455 = vmatprep.mubr.msk.f32.mxu0 %vm102_vm0, %v667_v6 }
  0xa7   :  { %456 = vmatmul.mubr.msk.f32.gmra.mrb[8].mxu0 %vm101_vm15, %v667_v6  ;;  %470 = vmatmul.mubr.msk.f32.gmra.mrb[6].mxu1 %vm115_vm1, %v667_v6 }
  0xa8   :  { %v86_v15 = vpop.permute.xlu1 %85  ;;  %471 = vmatprep.mubr.msk.f32.mxu1 %vm118_vm2, %v667_v6  ;;  %v62_v16 = vpop.permute.xlu0 %61 }
  0xa9   :  { %vm103_vm3 = vcmp.eq.s32.totalorder %v62_v16, %v747_v2  ;;  %vm104_vm4 = vcmp.eq.s32.totalorder %v62_v16, %v750_v3  ;;  %vm120_vm6 = vcmp.eq.s32.totalorder %v86_v15, %v750_v3  ;;  %vm119_vm9 = vcmp.eq.s32.totalorder %v86_v15, %v747_v2 }
  0xaa   :  { %457 = vmatprep.mubr.msk.f32.mxu0 %vm104_vm4, %v667_v6 }
  0xab   :  { %458 = vmatmul.mubr.msk.f32.gmra.mrb[10].mxu0 %vm103_vm3, %v667_v6  ;;  %472 = vmatmul.mubr.msk.f32.gmra.mrb[8].mxu1 %vm117_vm5, %v667_v6 }
  0xac   :  { %v89_v17 = vpop.permute.xlu1 %88  ;;  %473 = vmatprep.mubr.msk.f32.mxu1 %vm120_vm6, %v667_v6  ;;  %v65_v18 = vpop.permute.xlu0 %64 }
  0xad   :  { %vm105_vm7 = vcmp.eq.s32.totalorder %v65_v18, %v747_v2  ;;  %vm106_vm8 = vcmp.eq.s32.totalorder %v65_v18, %v750_v3  ;;  %vm122_vm10 = vcmp.eq.s32.totalorder %v89_v17, %v750_v3  ;;  %vm121_vm13 = vcmp.eq.s32.totalorder %v89_v17, %v747_v2 }
  0xae   :  { %459 = vmatprep.mubr.msk.f32.mxu0 %vm106_vm8, %v667_v6 }
  0xaf   :  { %460 = vmatmul.mubr.msk.f32.gmra.mrb[12].mxu0 %vm105_vm7, %v667_v6  ;;  %474 = vmatmul.mubr.msk.f32.gmra.mrb[10].mxu1 %vm119_vm9, %v667_v6 }
  0xb0   :  { %v92_v19 = vpop.permute.xlu1 %91  ;;  %475 = vmatprep.mubr.msk.f32.mxu1 %vm122_vm10, %v667_v6  ;;  %v68_v20 = vpop.permute.xlu0 %67 }
  0xb1   :  { %vm107_vm11 = vcmp.eq.s32.totalorder %v68_v20, %v747_v2  ;;  %vm108_vm12 = vcmp.eq.s32.totalorder %v68_v20, %v750_v3  ;;  %vm124_vm14 = vcmp.eq.s32.totalorder %v92_v19, %v750_v3  ;;  %vm123_vm15 = vcmp.eq.s32.totalorder %v92_v19, %v747_v2 }
  0xb2   :  { %461 = vmatprep.mubr.msk.f32.mxu0 %vm108_vm12, %v667_v6 }
  0xb3   :  { %462 = vmatmul.mubr.msk.f32.gmra.mrb[14].mxu0 %vm107_vm11, %v667_v6  ;;  %476 = vmatmul.mubr.msk.f32.gmra.mrb[12].mxu1 %vm121_vm13, %v667_v6 }
  0xb4   :  { %477 = vmatprep.mubr.msk.f32.mxu1 %vm124_vm14, %v667_v6 }
  0xb7   :  { %478 = vmatmul.mubr.msk.f32.gmra.mrb[14].mxu1 %vm123_vm15, %v667_v6 }
 0x16a   :  { %v511_v21 = vpop.f32.mrb[0].mxu0 }
 0x16b   :  { %v512_v22 = vpop.f32.mrb[1].mxu0 }
 0x16c   :  { %v513_v23 = vadd.f32 %v512_v22, %v511_v21 }
 0x16e   :  { %v366_v24 = vmul.f32 11.313708, %v513_v23  ;;  %v514_v25 = vpop.f32.mrb[2].mxu0  ;;  %v535_v26 = vpop.f32.mrb[0].mxu1 }
 0x16f   :  { %v515_v27 = vpop.f32.mrb[3].mxu0  ;;  %v536_v28 = vpop.f32.mrb[1].mxu1 }
 0x170   :  { %382 = vst [vmem:[#allocation5] sm:$0xff] %v366_v24  ;;  %v516_v29 = vadd.f32 %v515_v27, %v514_v25  ;;  %v537_v30 = vadd.f32 %v536_v28, %v535_v26 }
 0x172   :  { %v367_v31 = vmul.f32 11.313708, %v516_v29  ;;  %v374_v32 = vmul.f32 11.313708, %v537_v30  ;;  %v517_v33 = vpop.f32.mrb[4].mxu0  ;;  %v538_v34 = vpop.f32.mrb[2].mxu1 }
 0x173   :  { %v518_v35 = vpop.f32.mrb[5].mxu0  ;;  %v539_v36 = vpop.f32.mrb[3].mxu1 }
 0x174   :  { %383 = vst [vmem:[#allocation5 + $0x8] sm:$0xff] %v367_v31  ;;  %390 = vst [vmem:[#allocation5 + $0x40] sm:$0xff] %v374_v32  ;;  %v519_v37 = vadd.f32 %v518_v35, %v517_v33  ;;  %v540_v38 = vadd.f32 %v539_v36, %v538_v34 }
 0x176   :  { %v368_v39 = vmul.f32 11.313708, %v519_v37  ;;  %v375_v40 = vmul.f32 11.313708, %v540_v38  ;;  %v520_v41 = vpop.f32.mrb[6].mxu0  ;;  %v541_v42 = vpop.f32.mrb[4].mxu1 }
 0x177   :  { %v521_v43 = vpop.f32.mrb[7].mxu0  ;;  %v542_v44 = vpop.f32.mrb[5].mxu1 }
 0x178   :  { %384 = vst [vmem:[#allocation5 + $0x10] sm:$0xff] %v368_v39  ;;  %391 = vst [vmem:[#allocation5 + $0x48] sm:$0xff] %v375_v40  ;;  %v522_v45 = vadd.f32 %v521_v43, %v520_v41  ;;  %v543_v46 = vadd.f32 %v542_v44, %v541_v42 }
 0x17a   :  { %v369_v47 = vmul.f32 11.313708, %v522_v45  ;;  %v376_v48 = vmul.f32 11.313708, %v543_v46  ;;  %v523_v49 = vpop.f32.mrb[8].mxu0  ;;  %v544_v50 = vpop.f32.mrb[6].mxu1 }
 0x17b   :  { %v524_v51 = vpop.f32.mrb[9].mxu0  ;;  %v545_v52 = vpop.f32.mrb[7].mxu1 }
 0x17c   :  { %385 = vst [vmem:[#allocation5 + $0x18] sm:$0xff] %v369_v47  ;;  %392 = vst [vmem:[#allocation5 + $0x50] sm:$0xff] %v376_v48  ;;  %v525_v53 = vadd.f32 %v524_v51, %v523_v49  ;;  %v546_v54 = vadd.f32 %v545_v52, %v544_v50 }
 0x17e   :  { %v370_v55 = vmul.f32 11.313708, %v525_v53  ;;  %v377_v56 = vmul.f32 11.313708, %v546_v54  ;;  %v526_v57 = vpop.f32.mrb[10].mxu0  ;;  %v547_v58 = vpop.f32.mrb[8].mxu1 }
 0x17f   :  { %v527_v59 = vpop.f32.mrb[11].mxu0  ;;  %v548_v60 = vpop.f32.mrb[9].mxu1 }
 0x180   :  { %386 = vst [vmem:[#allocation5 + $0x20] sm:$0xff] %v370_v55  ;;  %393 = vst [vmem:[#allocation5 + $0x58] sm:$0xff] %v377_v56  ;;  %v528_v61 = vadd.f32 %v527_v59, %v526_v57  ;;  %v549_v62 = vadd.f32 %v548_v60, %v547_v58 }
 0x182   :  { %v371_v63 = vmul.f32 11.313708, %v528_v61  ;;  %v378_v0 = vmul.f32 11.313708, %v549_v62  ;;  %v529_v1 = vpop.f32.mrb[12].mxu0  ;;  %v550_v2 = vpop.f32.mrb[10].mxu1 }
 0x183   :  { %v530_v3 = vpop.f32.mrb[13].mxu0  ;;  %v551_v4 = vpop.f32.mrb[11].mxu1 }
 0x184   :  { %387 = vst [vmem:[#allocation5 + $0x28] sm:$0xff] %v371_v63  ;;  %394 = vst [vmem:[#allocation5 + $0x60] sm:$0xff] %v378_v0  ;;  %v531_v5 = vadd.f32 %v530_v3, %v529_v1  ;;  %v552_v6 = vadd.f32 %v551_v4, %v550_v2 }
 0x186   :  { %v372_v7 = vmul.f32 11.313708, %v531_v5  ;;  %v379_v8 = vmul.f32 11.313708, %v552_v6  ;;  %v532_v9 = vpop.f32.mrb[14].mxu0  ;;  %v553_v10 = vpop.f32.mrb[12].mxu1 }
 0x187   :  { %v533_v11 = vpop.f32.mrb[15].mxu0  ;;  %v554_v12 = vpop.f32.mrb[13].mxu1 }
 0x188   :  { %388 = vst [vmem:[#allocation5 + $0x30] sm:$0xff] %v372_v7  ;;  %395 = vst [vmem:[#allocation5 + $0x68] sm:$0xff] %v379_v8  ;;  %v534_v13 = vadd.f32 %v533_v11, %v532_v9  ;;  %v555_v14 = vadd.f32 %v554_v12, %v553_v10 }
 0x18a   :  { %v373_v15 = vmul.f32 11.313708, %v534_v13  ;;  %v380_v16 = vmul.f32 11.313708, %v555_v14  ;;  %v556_v17 = vpop.f32.mrb[14].mxu1 }
 0x18b   :  { %v557_v18 = vpop.f32.mrb[15].mxu1 }
 0x18c   :  { %389 = vst [vmem:[#allocation5 + $0x38] sm:$0xff] %v373_v15  ;;  %396 = vst [vmem:[#allocation5 + $0x70] sm:$0xff] %v380_v16  ;;  %v558_v19 = vadd.f32 %v557_v18, %v556_v17 }
 0x18e   :  { %v381_v20 = vmul.f32 11.313708, %v558_v19 }
 0x190   :  { %397 = vst [vmem:[#allocation5 + $0x78] sm:$0xff] %v381_v20 }
 0x191   :  { %648 = shalt.err (!%p645_p12)
}
 0x192   :  { %s649_s3 = scalar_lea.hbm %s833_s2, 2048 }
 0x193   :  { %p650_p13 = scmp.ne.s32.totalorder %s833_s2, %s649_s3  ;;  %p653_p0 = scmp.lt.u32.totalorder %s649_s3, %s833_s2 }
 0x195   :  { %p655_p1 = pnand %p653_p0, %p650_p13 }
 0x197   :  { %658 = shalt.err (!%p655_p1)
}
 0x198   :  { %409 = dma.vmem_to_hbm [thread:$0]  %s404_s28, 2048, %s833_s2, [#allocation4], %s664_s19, %s664_s19, %s665_s20  }
 0x199   :  { %661 = dma.done.wait [#allocation4], 2048  }
 0x19a   :  { %662 = vsyncadd [#allocation4], 4294965248 }
 0x19b   :  { %413 = vsyncpa [#allocation3], 1 }
 0x19c   :  { %414 = vsyncpa [#allocation4], 1 }

</bundles_post_ra>
